<compile_context>
chip_gen: v6e
topology: v6e:2x2x1
jax: 0.10.0
libtpu: 0.0.40
codegen_flags: <defaults>
</compile_context>

<pallas_src>
import math

import jax
import jax.numpy as jnp
from jax.experimental import pallas as pl
from jax.experimental.pallas import tpu as pltpu


# ----------------------------------------------------------------------------
# Fused Pallas kernel: planar-flow transform + logits + ELBO statistics
# ----------------------------------------------------------------------------
def elbo_kernel(x_ref, labels_ref, params_ref, b_ref, logits_ref, stats_ref):
    # x_ref:      (N, D)   natural layout, D lane-dense
    # labels_ref: (N, 1)
    # params_ref: (2K+3, D) rows = [w_0..w_{K-1}, u_0..u_{K-1}, mu, sigma, eps]
    # b_ref:      (K,)     SMEM scalars
    # logits_ref: (N, 1)
    # stats_ref:  (4,)     SMEM: [loglik, log_prior, log_joint, entropy]
    N, D = x_ref.shape
    K = (params_ref.shape[0] - 3) // 2
    half_log2pi = 0.5 * math.log(2.0 * math.pi)

    params = params_ref[...]                              # one small VMEM load
    mu = params[2 * K:2 * K + 1, :]                       # (1, D)
    sig = jax.nn.softplus(params[2 * K + 1:2 * K + 2, :])  # (1, D)
    eps = params[2 * K + 2:2 * K + 3, :]                  # (1, D)

    # --- NormalizingFlows.sample(): z_0 = mu + softplus(sigma) * eps ---------
    z = mu + sig * eps                                    # (1, D)

    # --- NormalizingFlows.transform(): K planar-flow steps (unrolled) --------
    # Accumulate sum(z_k^2) over ALL stored states z_0..z_K for the prior
    # (faithful to Normal(0,1).log_prob(self.z_k).sum() over the whole buffer).
    sumsq = jnp.sum(z * z)                                # scalar
    for k in range(K):                                    # K=2, statically unrolled
        w_k = params[k:k + 1, :]                          # (1, D)
        u_k = params[K + k:K + k + 1, :]                  # (1, D)
        b_k = b_ref[k]                                    # scalar (SMEM)
        neuron = jnp.tanh(jnp.sum(w_k * z, axis=1, keepdims=True) + b_k)  # (1,1)
        z = z + u_k * neuron                              # lane broadcast
        sumsq = sumsq + jnp.sum(z * z)
    z_last = z                                            # (1, D)  == z_K

    # --- forward(): logits = x @ z_K   (VPU mul + lane reduce, no MXU) -------
    logits_col = jnp.sum(x_ref[...] * z_last, axis=1, keepdims=True)  # (N, 1)
    logits_ref[...] = logits_col.astype(logits_ref.dtype)

    # --- loglik = Bernoulli(logits).log_prob(labels).sum() -------------------
    #     log p(y|logit) = y * logit - softplus(logit)
    y = labels_ref[...]                                   # (N, 1)
    loglik = jnp.sum(y * logits_col - jnp.logaddexp(logits_col, 0.0))

    # --- log_prior = Normal(0, 1).log_prob(z_k).sum()  (all K+1 states) ------
    log_prior = -0.5 * sumsq - (K + 1) * D * half_log2pi

    # --- log_joint ------------------------------------------------------------
    # TODO(synk): original PyTorch uses undefined name `log_lik`; interpreted
    # as `loglik`.
    log_joint = loglik + log_prior

    # --- entropy = Normal(mu, softplus(sigma)).log_prob(z_last).sum() --------
    # TODO(synk): original indexes zk[:, K+1], out of bounds for a (D, K+1)
    # buffer; interpreted as the last flow state z_K.
    zc = (z_last - mu) / sig
    entropy = jnp.sum(-0.5 * zc * zc - jnp.log(sig)) - D * half_log2pi

    # --- four cheap scalar stores into SMEM ----------------------------------
    stats_ref[0] = loglik
    stats_ref[1] = log_prior
    stats_ref[2] = log_joint
    stats_ref[3] = entropy


def elbo_pallas(x, labels, w, u, b, mu, sigma_raw, eps):
    """x: (N, D); labels: (N, 1); w, u: (D, K); b: (K,); mu, sigma_raw, eps: (D,)."""
    N, D = x.shape
    K = w.shape[1]

    # Pack all D-length parameter vectors into a single (2K+3, D) tile so the
    # kernel sees one small VMEM input instead of five tiny ones.
    params = jnp.concatenate(
        [w.T, u.T, mu[None, :], sigma_raw[None, :], eps[None, :]], axis=0)

    cost = pl.CostEstimate(
        flops=2 * N * D + 6 * N + 6 * D * (K + 1) + 10 * D,
        transcendentals=2 * N + 3 * D + 4 * K,   # logaddexp ~2/elem, softplus/log, tanh
        bytes_accessed=4 * (N * D + 2 * N + (2 * K + 3) * D + K + 4),
    )

    logits, stats = pl.pallas_call(
        elbo_kernel,
        out_shape=(
            jax.ShapeDtypeStruct((N, 1), jnp.float32),   # logits, natural shape
            jax.ShapeDtypeStruct((4,), jnp.float32),     # packed scalar stats
        ),
        in_specs=[
            pl.BlockSpec(memory_space=pltpu.VMEM),       # x (N, D)
            pl.BlockSpec(memory_space=pltpu.VMEM),       # labels (N, 1)
            pl.BlockSpec(memory_space=pltpu.VMEM),       # packed params
            pl.BlockSpec(memory_space=pltpu.SMEM),       # b (K,)
        ],
        out_specs=(
            pl.BlockSpec(memory_space=pltpu.VMEM),
            pl.BlockSpec(memory_space=pltpu.SMEM),
        ),
        cost_estimate=cost,
    )(x, labels, params, b)

    loglik = stats[0]
    log_prior = stats[1]
    log_joint = stats[2]
    entropy = stats[3]
    # TODO(synk): original ELBO.forward has no return statement; we expose the
    # computed statistics (loglik, log_prior, log_joint, entropy) and logits.
    return logits, loglik, log_prior, log_joint, entropy


# ----------------------------------------------------------------------------
# Pure-JAX reference (mirrors the same interpretation of the PyTorch module)
# ----------------------------------------------------------------------------
def elbo_ref(x, labels, w, u, b, mu, sigma_raw, eps):
    K = w.shape[1]
    half_log2pi = 0.5 * math.log(2.0 * math.pi)
    sig = jax.nn.softplus(sigma_raw)
    z = mu + sig * eps
    states = [z]
    for k in range(K):
        neuron = jnp.tanh(jnp.dot(w[:, k], z) + b[k])
        z = z + u[:, k] * neuron
        states.append(z)
    zk = jnp.stack(states, axis=1)                       # (D, K+1)
    z_last = zk[:, K]
    logits = x @ z_last[:, None]                         # (N, 1)
    loglik = jnp.sum(labels * logits - jnp.logaddexp(logits, 0.0))
    log_prior = jnp.sum(-0.5 * zk * zk - half_log2pi)
    log_joint = loglik + log_prior
    zc = (z_last - mu) / sig
    entropy = jnp.sum(-0.5 * zc * zc - jnp.log(sig) - half_log2pi)
    return logits, loglik, log_prior, log_joint, entropy


# ----------------------------------------------------------------------------
if __name__ == "__main__":
    D, K = 32, 2          # flow dimension / number of flow steps
    N = 8                 # batch size for x / labels

    key = jax.random.PRNGKey(0)
    kw, ku, kb, kmu, ksig, keps, kx, ky = jax.random.split(key, 8)

    w = jax.random.normal(kw, (D, K), jnp.float32)
    u = jax.random.normal(ku, (D, K), jnp.float32)
    b = jax.random.normal(kb, (K,), jnp.float32)
    mu = jax.random.normal(kmu, (D,), jnp.float32)
    sigma = jax.random.normal(ksig, (D,), jnp.float32)
    # TODO(synk): torch.randn inside NormalizingFlows.sample() is replaced by a
    # deterministic eps drawn in the host program and passed into the kernel.
    eps = jax.random.normal(keps, (D,), jnp.float32)

    x = jax.random.normal(kx, (N, D), jnp.float32)
    labels = jax.random.bernoulli(ky, 0.5, (N, 1)).astype(jnp.float32)

    fn = jax.jit(elbo_pallas)
    out = jax.block_until_ready(fn(x, labels, w, u, b, mu, sigma, eps))
    logits, loglik, log_prior, log_joint, entropy = out

    ref = elbo_ref(x, labels, w, u, b, mu, sigma, eps)
    for got, want in zip(out, ref):
        assert jnp.all(jnp.isfinite(got))
        assert jnp.allclose(got, want, rtol=1e-4, atol=1e-4), (got, want)

    print("KERNEL_OK")
</pallas_src>

<mosaic_0001>
module attributes {stable_mosaic.version = 11 : i64} {
  func.func @elbo_kernel(%arg0: memref<8x32xf32, #tpu.memory_space<vmem>>, %arg1: memref<8x1xf32, #tpu.memory_space<vmem>>, %arg2: memref<7x32xf32, #tpu.memory_space<vmem>>, %arg3: memref<2xf32, #tpu.memory_space<smem>>, %arg4: memref<8x1xf32, #tpu.memory_space<vmem>>, %arg5: memref<4xf32, #tpu.memory_space<smem>>) attributes {dimension_semantics = [], scalar_prefetch = 0 : i64, scratch_operands = 0 : i64, tpu.core_type = #tpu.core_type<tc>} {
    %c0 = arith.constant 0 : index
    %c0_0 = arith.constant 0 : index
    %0 = vector.load %arg2[%c0, %c0_0] : memref<7x32xf32, #tpu.memory_space<vmem>>, vector<7x32xf32>
    %1 = vector.extract_strided_slice %0 {offsets = [4, 0], sizes = [1, 32], strides = [1, 1]} : vector<7x32xf32> to vector<1x32xf32>
    %2 = vector.extract_strided_slice %0 {offsets = [5, 0], sizes = [1, 32], strides = [1, 1]} : vector<7x32xf32> to vector<1x32xf32>
    %cst = arith.constant 0.000000e+00 : f32
    %3 = vector.broadcast %cst : f32 to vector<1x32xf32>
    %4 = arith.maximumf %2, %3 : vector<1x32xf32>
    %5 = vector.broadcast %cst : f32 to vector<1x32xf32>
    %6 = arith.subf %2, %5 : vector<1x32xf32>
    %7 = arith.cmpf one, %6, %6 : vector<1x32xf32>
    %8 = vector.broadcast %cst : f32 to vector<1x32xf32>
    %9 = arith.addf %2, %8 : vector<1x32xf32>
    %10 = math.absf %6 : vector<1x32xf32>
    %cst_1 = arith.constant 0.000000e+00 : f32
    %11 = vector.broadcast %cst_1 : f32 to vector<1x32xf32>
    %12 = arith.subf %11, %10 : vector<1x32xf32>
    %13 = math.exp %12 : vector<1x32xf32>
    %14 = math.log1p %13 : vector<1x32xf32>
    %15 = arith.addf %4, %14 : vector<1x32xf32>
    %16 = arith.select %7, %9, %15 : vector<1x32xi1>, vector<1x32xf32>
    %17 = vector.extract_strided_slice %0 {offsets = [6, 0], sizes = [1, 32], strides = [1, 1]} : vector<7x32xf32> to vector<1x32xf32>
    %18 = arith.mulf %16, %17 : vector<1x32xf32>
    %19 = arith.addf %1, %18 : vector<1x32xf32>
    %20 = arith.mulf %19, %19 : vector<1x32xf32>
    %21 = vector.shape_cast %20 : vector<1x32xf32> to vector<1x1x32xf32>
    %cst_2 = arith.constant dense<0.000000e+00> : vector<1xf32>
    %22 = vector.multi_reduction <add>, %21, %cst_2 [1, 2] : vector<1x1x32xf32> to vector<1xf32>
    %23 = vector.shape_cast %22 : vector<1xf32> to vector<1x1x1xf32>
    %24 = vector.extract %23[0, 0, 0] : f32 from vector<1x1x1xf32>
    %25 = vector.extract_strided_slice %0 {offsets = [0, 0], sizes = [1, 32], strides = [1, 1]} : vector<7x32xf32> to vector<1x32xf32>
    %26 = vector.extract_strided_slice %0 {offsets = [2, 0], sizes = [1, 32], strides = [1, 1]} : vector<7x32xf32> to vector<1x32xf32>
    %c0_3 = arith.constant 0 : index
    %27 = memref.load %arg3[%c0_3] : memref<2xf32, #tpu.memory_space<smem>>
    %28 = arith.mulf %25, %19 : vector<1x32xf32>
    %cst_4 = arith.constant dense<0.000000e+00> : vector<1xf32>
    %29 = vector.multi_reduction <add>, %28, %cst_4 [1] : vector<1x32xf32> to vector<1xf32>
    %30 = vector.shape_cast %29 : vector<1xf32> to vector<1x1xf32>
    %31 = vector.broadcast %27 : f32 to vector<1x1xf32>
    %32 = arith.addf %30, %31 : vector<1x1xf32>
    %33 = math.tanh %32 : vector<1x1xf32>
    %34 = vector.broadcast %33 : vector<1x1xf32> to vector<1x32xf32>
    %35 = arith.mulf %26, %34 : vector<1x32xf32>
    %36 = arith.addf %19, %35 : vector<1x32xf32>
    %37 = arith.mulf %36, %36 : vector<1x32xf32>
    %38 = vector.shape_cast %37 : vector<1x32xf32> to vector<1x1x32xf32>
    %cst_5 = arith.constant dense<0.000000e+00> : vector<1xf32>
    %39 = vector.multi_reduction <add>, %38, %cst_5 [1, 2] : vector<1x1x32xf32> to vector<1xf32>
    %40 = vector.shape_cast %39 : vector<1xf32> to vector<1x1x1xf32>
    %41 = vector.extract %40[0, 0, 0] : f32 from vector<1x1x1xf32>
    %42 = arith.addf %24, %41 : f32
    %43 = vector.extract_strided_slice %0 {offsets = [1, 0], sizes = [1, 32], strides = [1, 1]} : vector<7x32xf32> to vector<1x32xf32>
    %44 = vector.extract_strided_slice %0 {offsets = [3, 0], sizes = [1, 32], strides = [1, 1]} : vector<7x32xf32> to vector<1x32xf32>
    %c1 = arith.constant 1 : index
    %45 = memref.load %arg3[%c1] : memref<2xf32, #tpu.memory_space<smem>>
    %46 = arith.mulf %43, %36 : vector<1x32xf32>
    %cst_6 = arith.constant dense<0.000000e+00> : vector<1xf32>
    %47 = vector.multi_reduction <add>, %46, %cst_6 [1] : vector<1x32xf32> to vector<1xf32>
    %48 = vector.shape_cast %47 : vector<1xf32> to vector<1x1xf32>
    %49 = vector.broadcast %45 : f32 to vector<1x1xf32>
    %50 = arith.addf %48, %49 : vector<1x1xf32>
    %51 = math.tanh %50 : vector<1x1xf32>
    %52 = vector.broadcast %51 : vector<1x1xf32> to vector<1x32xf32>
    %53 = arith.mulf %44, %52 : vector<1x32xf32>
    %54 = arith.addf %36, %53 : vector<1x32xf32>
    %55 = arith.mulf %54, %54 : vector<1x32xf32>
    %56 = vector.shape_cast %55 : vector<1x32xf32> to vector<1x1x32xf32>
    %cst_7 = arith.constant dense<0.000000e+00> : vector<1xf32>
    %57 = vector.multi_reduction <add>, %56, %cst_7 [1, 2] : vector<1x1x32xf32> to vector<1xf32>
    %58 = vector.shape_cast %57 : vector<1xf32> to vector<1x1x1xf32>
    %59 = vector.extract %58[0, 0, 0] : f32 from vector<1x1x1xf32>
    %60 = arith.addf %42, %59 : f32
    %c0_8 = arith.constant 0 : index
    %c0_9 = arith.constant 0 : index
    %61 = vector.load %arg0[%c0_8, %c0_9] : memref<8x32xf32, #tpu.memory_space<vmem>>, vector<8x32xf32>
    %62 = vector.broadcast %54 : vector<1x32xf32> to vector<8x32xf32>
    %63 = arith.mulf %61, %62 : vector<8x32xf32>
    %cst_10 = arith.constant dense<0.000000e+00> : vector<8xf32>
    %64 = vector.multi_reduction <add>, %63, %cst_10 [1] : vector<8x32xf32> to vector<8xf32>
    %65 = vector.shape_cast %64 : vector<8xf32> to vector<8x1xf32>
    %c0_11 = arith.constant 0 : index
    %c0_12 = arith.constant 0 : index
    %66 = vector.load %arg4[%c0_11, %c0_12] : memref<8x1xf32, #tpu.memory_space<vmem>>, vector<8x1xf32>
    tpu.vector_store %arg4[%c0_11, %c0_12], %65 {strides = array<i32>} : memref<8x1xf32, #tpu.memory_space<vmem>>, vector<8x1xf32>,
    %c0_13 = arith.constant 0 : index
    %c0_14 = arith.constant 0 : index
    %67 = vector.load %arg1[%c0_13, %c0_14] : memref<8x1xf32, #tpu.memory_space<vmem>>, vector<8x1xf32>
    %68 = arith.mulf %67, %65 : vector<8x1xf32>
    %cst_15 = arith.constant 0.000000e+00 : f32
    %69 = vector.broadcast %cst_15 : f32 to vector<8x1xf32>
    %70 = arith.maximumf %65, %69 : vector<8x1xf32>
    %71 = vector.broadcast %cst_15 : f32 to vector<8x1xf32>
    %72 = arith.subf %65, %71 : vector<8x1xf32>
    %73 = arith.cmpf one, %72, %72 : vector<8x1xf32>
    %74 = vector.broadcast %cst_15 : f32 to vector<8x1xf32>
    %75 = arith.addf %65, %74 : vector<8x1xf32>
    %76 = math.absf %72 : vector<8x1xf32>
    %cst_16 = arith.constant 0.000000e+00 : f32
    %77 = vector.broadcast %cst_16 : f32 to vector<8x1xf32>
    %78 = arith.subf %77, %76 : vector<8x1xf32>
    %79 = math.exp %78 : vector<8x1xf32>
    %80 = math.log1p %79 : vector<8x1xf32>
    %81 = arith.addf %70, %80 : vector<8x1xf32>
    %82 = arith.select %73, %75, %81 : vector<8x1xi1>, vector<8x1xf32>
    %83 = arith.subf %68, %82 : vector<8x1xf32>
    %84 = vector.shape_cast %83 : vector<8x1xf32> to vector<1x8x1xf32>
    %cst_17 = arith.constant dense<0.000000e+00> : vector<1xf32>
    %85 = vector.multi_reduction <add>, %84, %cst_17 [1, 2] : vector<1x8x1xf32> to vector<1xf32>
    %86 = vector.shape_cast %85 : vector<1xf32> to vector<1x1x1xf32>
    %87 = vector.extract %86[0, 0, 0] : f32 from vector<1x1x1xf32>
    %cst_18 = arith.constant -5.000000e-01 : f32
    %88 = arith.mulf %cst_18, %60 : f32
    %cst_19 = arith.constant 8.821810e+01 : f32
    %89 = arith.subf %88, %cst_19 : f32
    %90 = arith.addf %87, %89 : f32
    %91 = arith.subf %54, %1 : vector<1x32xf32>
    %92 = arith.divf %91, %16 : vector<1x32xf32>
    %cst_20 = arith.constant -5.000000e-01 : f32
    %93 = vector.broadcast %cst_20 : f32 to vector<1x32xf32>
    %94 = arith.mulf %93, %92 : vector<1x32xf32>
    %95 = arith.mulf %94, %92 : vector<1x32xf32>
    %96 = math.log %16 : vector<1x32xf32>
    %97 = arith.subf %95, %96 : vector<1x32xf32>
    %98 = vector.shape_cast %97 : vector<1x32xf32> to vector<1x1x32xf32>
    %cst_21 = arith.constant dense<0.000000e+00> : vector<1xf32>
    %99 = vector.multi_reduction <add>, %98, %cst_21 [1, 2] : vector<1x1x32xf32> to vector<1xf32>
    %100 = vector.shape_cast %99 : vector<1xf32> to vector<1x1x1xf32>
    %101 = vector.extract %100[0, 0, 0] : f32 from vector<1x1x1xf32>
    %cst_22 = arith.constant 29.4060326 : f32
    %102 = arith.subf %101, %cst_22 : f32
    %c0_23 = arith.constant 0 : index
    %103 = memref.load %arg5[%c0_23] : memref<4xf32, #tpu.memory_space<smem>>
    memref.store %87, %arg5[%c0_23] : memref<4xf32, #tpu.memory_space<smem>>
    %c1_24 = arith.constant 1 : index
    %104 = memref.load %arg5[%c1_24] : memref<4xf32, #tpu.memory_space<smem>>
    memref.store %89, %arg5[%c1_24] : memref<4xf32, #tpu.memory_space<smem>>
    %c2 = arith.constant 2 : index
    %105 = memref.load %arg5[%c2] : memref<4xf32, #tpu.memory_space<smem>>
    memref.store %90, %arg5[%c2] : memref<4xf32, #tpu.memory_space<smem>>
    %c3 = arith.constant 3 : index
    %106 = memref.load %arg5[%c3] : memref<4xf32, #tpu.memory_space<smem>>
    memref.store %102, %arg5[%c3] : memref<4xf32, #tpu.memory_space<smem>>
    return
  }
}

</mosaic_0001>

<bundles_post_ra>
// kernel: elbo_pallas.1
= control target key start
LH: loop header
LB: loop body
LE: loop exit
PB: predicated region body
PF: predicated region fallthrough
CT: control target
= control target key end

     0   :  { %11 = vsyncpa [#allocation3], 0  ;;  %s376_s0 = inlined_call_operand.vmem [shape: f32[8,32], index: 0, kind: input, shape index: {}]   ;;  %s377_s1 = inlined_call_operand.vmem [shape: f32[8,1], index: 1, kind: input, shape index: {}]   ;;  %s378_s2 = inlined_call_operand.vmem [shape: f32[7,32], index: 2, kind: input, shape index: {}]   ;;  %s379_s3 = inlined_call_operand.vmem [shape: f32[2], index: 3, kind: input, shape index: {}]   ;;  %s380_s4 = inlined_call_operand.vmem [shape: f32[8,1], index: 4, kind: output, shape index: {0}]   ;;  %s381_s5 = inlined_call_operand.vmem [shape: f32[4], index: 5, kind: output, shape index: {1}]  }
   0x1   :  { %12 = vsyncpa [#allocation4], 0  ;;  %s25_s20 = sshll.u32 %s379_s3, 4  ;;  %s26_s20 = int_to_ptr.vmem [resolvable:$true] %s25_s20 }
   0x2   :  { %s277_s21 = scalar_lea.vmem %s26_s20, 16  ;;  %p282_p1 = scmp.lt.s32.totalorder %s26_s20, %s26_s20 }
   0x3   :  { %p278_p0 = scmp.ne.s32.totalorder %s26_s20, %s277_s21  ;;  %p283_p2 = scmp.lt.s32.totalorder %s277_s21, %s277_s21 }
   0x5   :  { %p284_p3 = por %p283_p2, %p282_p1 }
   0x7   :  { %p285_p4 = pnand %p284_p3, %p278_p0 }
   0x9   :  { %288 = shalt.err (!%p285_p4)
}
   0xa   :  { %s305_s22 = smov [#allocation2]  }
   0xb   :  { %28 = dma.vmem_to_smem %s26_s20, 16, %s305_s22, [#allocation3]  }
   0xc   :  { %301 = dma.done.wait [#allocation3], 16  }
   0xd   :  { %302 = vsyncadd [#allocation3], 4294967280 }
   0xe   :  { %32 = sfence }
   0xf   :  { %v343_v0 = vld [vmem:[%s378_s2] sm:$0x7f]  ;;  %vm64_vm2 = vcmask 253952   ;;  %s75_s2 = sld [smem:[#allocation2]]  ;;  %vm114_vm3 = vcmask 254977   ;;  %v145_v41 = vlaneseq  ;;  %vm150_vm4 = vcmask 261120  }
  0x10   :  { %v37_v1 = vand.u32 2147483647, %v343_v0  ;;  %v34_v11 = vmax.f32 %v343_v0, 0.0  ;;  %vm35_vm1 = vcmp.ne.f32.partialorder %v343_v0, %v343_v0  ;;  %v53_v14 = vrot.slane %v343_v0, 1  ;;  %s246_s3 = sld [smem:[#allocation2 + $0x1]]  ;;  %v144_v52 = vld [vmem:[%s376_s0] sm:$0xff] }
  0x11   :  { %v146_v44 = vshrl.u32 %v145_v41, 7  ;;  %vm154_vm5 = vcmask 7168   ;;  %s234_s13 = sshll.u32 %s381_s5, 4  ;;  %s235_s13 = int_to_ptr.vmem [resolvable:$true] %s234_s13 }
  0x12   :  { %v38_v2 = vsub.f32 0.0, %v37_v1  ;;  %s289_s17 = scalar_lea.vmem %s235_s13, 16  ;;  %p294_p6 = scmp.lt.s32.totalorder %s235_s13, %s235_s13 }
  0x13   :  { %v147_v47 = vsub.s32 4, %v146_v44  ;;  %p290_p5 = scmp.ne.s32.totalorder %s235_s13, %s289_s17  ;;  %p295_p7 = scmp.lt.s32.totalorder %s289_s17, %s289_s17 }
  0x14   :  { %v39_v3 = vmul.f32 1.442695, %v38_v2 }
  0x15   :  { %v83_v23 = vstv %s75_s2  ;;  %p296_p8 = por %p295_p7, %p294_p6 }
  0x16   :  { %261 = vpow2.f32 %v39_v3  ;;  %v118_v37 = vstv %s246_s3 }
  0x17   :  { %p297_p9 = pnand %p296_p8, %p290_p5 }
  0x23   :  { %v262_v4 = vpop.eup %261 }
  0x24   :  { %v41_v5 = vadd.f32 1.0, %v262_v4  ;;  %v44_v6 = vmul.f32 -0.5, %v262_v4  ;;  %v47_v8 = vand.u32 2147483647, %v262_v4 }
  0x26   :  { %263 = vlog2.f32 %v41_v5  ;;  %v45_v7 = vadd.f32 1.0, %v44_v6  ;;  %vm48_vm0 = vcmp.lt.f32.partialorder %v47_v8, 0.0004427343 }
  0x28   :  { %v46_v9 = vmul.f32 %v262_v4, %v45_v7 }
  0x33   :  { %v264_v10 = vpop.eup %263 }
  0x34   :  { %v43_v12 = vmul.f32 0.6931472, %v264_v10 }
  0x36   :  { %v49_v13 = vsel %vm48_vm0, %v46_v9, %v43_v12 }
  0x37   :  { %v50_v15 = vadd.f32 %v49_v13, %v34_v11 }
  0x39   :  { %v51_v16 = vsel %vm35_vm1, %v343_v0, %v50_v15 }
  0x3a   :  { %v55_v17 = vmul.f32 %v53_v14, %v51_v16  ;;  %v192_v40 = vrot.slane %v51_v16, 1 }
  0x3c   :  { %v57_v18 = vrot.slane %v55_v17, 1 }
  0x3e   :  { %v59_v19 = vadd.f32 %v57_v18, %v343_v0 }
  0x40   :  { %v77_v20 = vrot.slane %v59_v19, 4  ;;  %v60_v50 = vmul.f32 %v59_v19, %v59_v19 }
  0x42   :  { %v79_v21 = vmul.f32 %v77_v20, %v343_v0  ;;  %v62_v57 = vrot.slane %v60_v50, 4 }
  0x44   :  { %v80_v22 = vsel %vm64_vm2, %v79_v21, 0.0  ;;  %v65_v63 = vsel %vm64_vm2, %v62_v57, 0.0 }
  0x45   :  { %81 = vadd.xlane.f32.xlu0 %v80_v22 }
  0xce   :  { %v82_v24 = vpop.xlane.xlu0 %81 }
  0xcf   :  { %v84_v25 = vadd.f32 %v83_v23, %v82_v24 }
  0xd1   :  { %265 = vtanh.f32 %v84_v25 }
  0xde   :  { %v266_v26 = vpop.eup %265 }
  0xdf   :  { %v87_v27 = vrot.slane %v266_v26, 6 }
  0xe1   :  { %v89_v28 = vmul.f32 %v87_v27, %v343_v0 }
  0xe3   :  { %v91_v29 = vrot.slane %v89_v28, 6 }
  0xe5   :  { %v93_v30 = vadd.f32 %v91_v29, %v59_v19 }
  0xe7   :  { %v111_v31 = vrot.slane %v93_v30, 3  ;;  %v94_v32 = vmul.f32 %v93_v30, %v93_v30 }
  0xe9   :  { %v113_v33 = vmul.f32 %v111_v31, %v343_v0  ;;  %v96_v35 = vrot.slane %v94_v32, 4 }
  0xeb   :  { %v115_v34 = vsel %vm114_vm3, %v113_v33, 0.0  ;;  %v98_v36 = vsel %vm64_vm2, %v96_v35, 0.0 }
  0xec   :  { %116 = vadd.xlane.f32.xlu0 %v115_v34 }
  0xf0   :  { %99 = vadd.xlane.f32.xlu0 %v98_v36 }
 0x175   :  { %v117_v38 = vpop.xlane.xlu0 %116 }
 0x176   :  { %v119_v39 = vadd.f32 %v118_v37, %v117_v38 }
 0x178   :  { %267 = vtanh.f32 %v119_v39  ;;  %v156_v39 = vld [vmem:[%s377_s1] sm:$0xff] }
 0x179   :  { %269 = vlog2.f32 %v51_v16  ;;  %v100_v6 = vpop.xlane.xlu0 %99 }
 0x17a   :  { %271 = vrcp.f32 %v192_v40  ;;  %v101_v7 = vrot.slane %v100_v6, 4 }
 0x17c   :  { %v102_v8 = vadd.f32 %v101_v7, %v100_v6 }
 0x17e   :  { %v103_v12 = vrot.slane %v102_v8, 2 }
 0x180   :  { %v104_v18 = vadd.f32 %v103_v12, %v102_v8 }
 0x182   :  { %v105_v23 = vrot.slane %v104_v18, 1 }
 0x184   :  { %v106_v28 = vadd.f32 %v105_v23, %v104_v18 }
 0x185   :  { %v268_v42 = vpop.eup %267 }
 0x186   :  { %v122_v43 = vrot.slane %v268_v42, 6  ;;  %v270_v48 = vpop.eup %269 }
 0x187   :  { %v272_v51 = vpop.eup %271  ;;  %v199_v55 = vmul.f32 0.6931472, %v270_v48 }
 0x188   :  { %v124_v45 = vmul.f32 %v122_v43, %v343_v0 }
 0x189   :  { %v201_v62 = vrot.slane %v199_v55, 1 }
 0x18a   :  { %v126_v46 = vrot.slane %v124_v45, 7 }
 0x18c   :  { %v128_v49 = vadd.f32 %v126_v46, %v93_v30 }
 0x18e   :  { %v148_v53 = vrot.slane %v128_v49, %v147_v47  ;;  %v190_v54 = vsub.f32 %v128_v49, %v343_v0  ;;  %v129_v60 = vmul.f32 %v128_v49, %v128_v49 }
 0x190   :  { %v149_v56 = vmul.f32 %v148_v53, %v144_v52  ;;  %v195_v58 = vmul.f32 %v272_v51, %v190_v54  ;;  %v131_v2 = vrot.slane %v129_v60, 4 }
 0x192   :  { %v151_v59 = vsel %vm150_vm4, %v149_v56, 0.0  ;;  %v196_v61 = vmul.f32 -0.5, %v195_v58  ;;  %v133_v4 = vsel %vm64_vm2, %v131_v2, 0.0 }
 0x193   :  { %152 = vadd.xlane.f32.xlu1 %v151_v59 }
 0x194   :  { %v197_v1 = vmul.f32 %v196_v61, %v195_v58 }
 0x196   :  { %v203_v3 = vsub.f32 %v197_v1, %v201_v62 }
 0x197   :  { %66 = vadd.xlane.f32.xlu1 %v65_v63 }
 0x198   :  { %v205_v5 = vrot.slane %v203_v3, 4 }
 0x19a   :  { %v207_v0 = vsel %vm64_vm2, %v205_v5, 0.0 }
 0x19b   :  { %134 = vadd.xlane.f32.xlu1 %v133_v4 }
 0x19f   :  { %208 = vadd.xlane.f32.xlu1 %v207_v0 }
 0x21c   :  { %v153_v9 = vpop.xlane.xlu1 %152 }
 0x21d   :  { %v161_v10 = vand.u32 2147483647, %v153_v9  ;;  %155 = vst.msk [vmem:[%s380_s4] sm:$0xff] %vm154_vm5, %v153_v9  ;;  %v158_v40 = vmax.f32 %v153_v9, 0.0  ;;  %v157_v43 = vmul.f32 %v156_v39, %v153_v9  ;;  %vm159_vm7 = vcmp.ne.f32.partialorder %v153_v9, %v153_v9 }
 0x21f   :  { %v162_v11 = vsub.f32 0.0, %v161_v10 }
 0x220   :  { %v67_v13 = vpop.xlane.xlu1 %66 }
 0x221   :  { %v163_v14 = vmul.f32 1.442695, %v162_v11  ;;  %v68_v15 = vrot.slane %v67_v13, 4 }
 0x223   :  { %273 = vpow2.f32 %v163_v14  ;;  %v69_v16 = vadd.f32 %v68_v15, %v67_v13 }
 0x224   :  { %v135_v17 = vpop.xlane.xlu1 %134 }
 0x225   :  { %v70_v19 = vrot.slane %v69_v16, 2  ;;  %v136_v20 = vrot.slane %v135_v17, 4 }
 0x227   :  { %v137_v21 = vadd.f32 %v136_v20, %v135_v17  ;;  %v71_v22 = vadd.f32 %v70_v19, %v69_v16 }
 0x228   :  { %v209_v47 = vpop.xlane.xlu1 %208 }
 0x229   :  { %v138_v24 = vrot.slane %v137_v21, 2  ;;  %v72_v25 = vrot.slane %v71_v22, 1  ;;  %v210_v48 = vrot.slane %v209_v47, 4 }
 0x22b   :  { %v73_v26 = vadd.f32 %v72_v25, %v71_v22  ;;  %v139_v27 = vadd.f32 %v138_v24, %v137_v21  ;;  %v211_v49 = vadd.f32 %v210_v48, %v209_v47 }
 0x22d   :  { %249 = vpush %v73_v26  ;;  %v140_v29 = vrot.slane %v139_v27, 1  ;;  %v212_v50 = vrot.slane %v211_v49, 2 }
 0x22e   :  { %251 = vpush %v106_v28 }
 0x22f   :  { %v141_v30 = vadd.f32 %v140_v29, %v139_v27  ;;  %v213_v54 = vadd.f32 %v212_v50, %v211_v49 }
 0x230   :  { %v274_v31 = vpop.eup %273 }
 0x231   :  { %253 = vpush %v141_v30  ;;  %v165_v32 = vadd.f32 1.0, %v274_v31  ;;  %v168_v33 = vmul.f32 -0.5, %v274_v31  ;;  %v171_v35 = vand.u32 2147483647, %v274_v31  ;;  %v214_v57 = vrot.slane %v213_v54, 1 }
 0x233   :  { %275 = vlog2.f32 %v165_v32  ;;  %v169_v34 = vadd.f32 1.0, %v168_v33  ;;  %vm172_vm6 = vcmp.lt.f32.partialorder %v171_v35, 0.0004427343  ;;  %v215_v60 = vadd.f32 %v214_v57, %v213_v54 }
 0x235   :  { %v170_v38 = vmul.f32 %v274_v31, %v169_v34 }
 0x240   :  { %v276_v36 = vpop.eup %275 }
 0x241   :  { %v167_v37 = vmul.f32 0.6931472, %v276_v36 }
 0x243   :  { %v173_v41 = vsel %vm172_vm6, %v170_v38, %v167_v37 }
 0x244   :  { %v174_v42 = vadd.f32 %v173_v41, %v158_v40 }
 0x246   :  { %v175_v44 = vsel %vm159_vm7, %v153_v9, %v174_v42 }
 0x247   :  { %v176_v45 = vsub.f32 %v157_v43, %v175_v44 }
 0x249   :  { %v177_v46 = vsel %vm154_vm5, %v176_v45, 0.0 }
 0x24a   :  { %178 = vadd.xlane.f32.xlu0 %v177_v46 }
 0x25e   :  { %s250_s29 = spop %249 }
 0x25f   :  { %s252_s30 = spop %251 }
 0x260   :  { %s108_s6 = sadd.f32 %s252_s30, %s250_s29 }
 0x262   :  { %s254_s7 = spop %253 }
 0x263   :  { %s143_s8 = sadd.f32 %s254_s7, %s108_s6 }
 0x265   :  { %s187_s9 = smul.f32 -0.5, %s143_s8 }
 0x267   :  { %s247_s10 = sadd.f32 -88.2181, %s187_s9 }
 0x269   :  { %221 = sst [smem:[#allocation5 + $0x1]] %s247_s10 }
 0x2d3   :  { %v179_v51 = vpop.xlane.xlu0 %178 }
 0x2d4   :  { %v180_v52 = vrot.slane %v179_v51, 4 }
 0x2d6   :  { %v181_v53 = vadd.f32 %v180_v52, %v179_v51 }
 0x2d8   :  { %v182_v55 = vrot.slane %v181_v53, 2 }
 0x2da   :  { %v183_v56 = vadd.f32 %v182_v55, %v181_v53 }
 0x2dc   :  { %v184_v58 = vrot.slane %v183_v56, 1 }
 0x2de   :  { %v185_v59 = vadd.f32 %v184_v58, %v183_v56 }
 0x2e0   :  { %255 = vpush %v185_v59 }
 0x2e1   :  { %257 = vpush %v215_v60 }
 0x311   :  { %s256_s1 = spop %255 }
 0x312   :  { %s189_s14 = sadd.f32 %s256_s1, %s247_s10  ;;  %s258_s15 = spop %257 }
 0x313   :  { %219 = sst [smem:[#allocation5]] %s256_s1 }
 0x314   :  { %223 = sst [smem:[#allocation5 + $0x2]] %s189_s14 }
 0x315   :  { %s248_s16 = sadd.f32 -29.406033, %s258_s15 }
 0x317   :  { %225 = sst [smem:[#allocation5 + $0x3]] %s248_s16 }
 0x318   :  { %300 = shalt.err (!%p297_p9)
}
 0x319   :  { %s306_s18 = smov [#allocation5]  }
 0x31a   :  { %237 = dma.smem_to_vmem %s306_s18, 16, %s235_s13, [#allocation4]  }
 0x31b   :  { %303 = dma.done.wait [#allocation4], 16  }
 0x31c   :  { %304 = vsyncadd [#allocation4], 4294967280 }
 0x31d   :  { %243 = sfence }
 0x31e   :  { %244 = vsyncpa [#allocation3], 1 }
 0x31f   :  { %245 = vsyncpa [#allocation4], 1 }

</bundles_post_ra>
